<compile_context>
chip_gen: v6e
topology: v6e:2x2x1
jax: 0.10.0
libtpu: 0.0.40
codegen_flags: <defaults>
</compile_context>

<pallas_src>
import jax
import jax.numpy as jnp
from jax.experimental import pallas as pl
from jax.experimental.pallas import tpu as pltpu

NEG_SLOPE = 0.01       # F.leaky_relu default
BN_EPS = 1e-5          # nn.BatchNorm1d default
MASK_VAL = -2e30       # logit for non-edges
M_INIT = -1e30         # online-softmax running-max init (> MASK_VAL so exp() -> 0)


def _round_up(x, m):
    return (x + m - 1) // m * m


def _vmem_capacity_bytes():
    try:
        return int(pltpu.get_tpu_info().vmem_capacity_bytes)
    except Exception:
        return 64 * 1024 * 1024   # conservative (v7x per-TensorCore)


def _tiling(N):
    """Return (Np, TM, TK): padded node count, dst-row tile, src-col tile."""
    if N <= 512:
        # single block in both axes: no per-grid-step pipeline overhead
        Np = max(_round_up(N, 32), 32)   # 32 keeps int8 sublane tiling clean
        return Np, Np, Np
    big_vmem = _vmem_capacity_bytes() >= 96 * 1024 * 1024   # v5e/v6e 128 MiB vs v7x 64 MiB
    TM = 256 if big_vmem else 128        # v6e: feed the 256-wide MXU; v7x: keep 128
    TK = 512
    return _round_up(N, TK), TM, TK


def prepare_adj(adj, n_pad):
    """Pad + quantize the [N, N] mask (adj[dst, src]) to [n_pad, n_pad] int8.

    The mask rarely changes across forward calls -- compute once and cache it,
    then pass via `adj_prepped=` to keep the pad/cast off the per-step path.
    """
    N = adj.shape[0]
    return jnp.zeros((n_pad, n_pad), jnp.int8).at[:N, :N].set((adj > 0).astype(jnp.int8))


# ---------------------------------------------------------------------------
# Kernel 1: fc (no bias) + fused attention projections.
#   z = h @ W^T                      [TM, FP]   (bf16 MXU, f32 accumulate)
#   s = z @ [a_src_col | a_dst_col]  [TM, 2]
# ---------------------------------------------------------------------------
def gat_proj_kernel(h_ref, wT_ref, a_ref, z_ref, s_ref):
    z = jnp.dot(h_ref[...], wT_ref[...], preferred_element_type=jnp.float32)
    z_ref[...] = z.astype(jnp.bfloat16)
    s_ref[...] = jnp.dot(z, a_ref[...], preferred_element_type=jnp.float32)


# ---------------------------------------------------------------------------
# Kernel 2: per (dst tile, src tile): masked ONLINE softmax over incoming edges
# + weighted aggregation (bf16 MXU) + folded BatchNorm1d(eval) + ELU.
# ---------------------------------------------------------------------------
def gat_attn_kernel(sdst_ref, ssrc_ref, z_ref, adj_ref, scale_ref, shift_ref,
                    out_ref, m_sc, l_sc, acc_sc):
    j = pl.program_id(1)

    @pl.when(j == 0)
    def _():
        m_sc[...] = jnp.full_like(m_sc, M_INIT)
        l_sc[...] = jnp.zeros_like(l_sc)
        acc_sc[...] = jnp.zeros_like(acc_sc)

    # edge logits e[v, u] = leaky_relu(a_dst.z_v + a_src.z_u); leaky_relu and
    # the adjacency mask fused into one select tree; int8 mask compared directly.
    e = sdst_ref[...] + ssrc_ref[...]                               # [TM, TK]
    e = jnp.where(adj_ref[...] > 0,
                  jnp.where(e > 0, e, NEG_SLOPE * e),
                  MASK_VAL)

    # online softmax over src tiles (masked entries underflow exp() to exactly 0
    # because MASK_VAL < M_INIT; rows need >= 1 real edge overall -- self-loops).
    m_prev = m_sc[...]
    m_new = jnp.maximum(m_prev, jnp.max(e, axis=-1, keepdims=True))  # [TM, 1]
    corr = jnp.exp(m_prev - m_new)
    p = jnp.exp(e - m_new)                                           # unnormalized
    l_sc[...] = corr * l_sc[...] + jnp.sum(p, axis=-1, keepdims=True)
    acc_sc[...] = corr * acc_sc[...] + jnp.dot(
        p.astype(jnp.bfloat16), z_ref[...], preferred_element_type=jnp.float32)
    m_sc[...] = m_new
    # TODO(synk): attention dropout is identity here (inference mode).

    @pl.when(j == pl.num_programs(1) - 1)
    def _():
        # deferred softmax normalization: EUP approx reciprocal + one Newton step
        l = l_sc[...]
        r = pl.reciprocal(l, approx=True)
        r = r * (2.0 - l * r)                                        # [TM, 1] only
        # folded BatchNorm1d (eval, running stats) + ELU(alpha=1)
        hn = acc_sc[...] * r * scale_ref[...] + shift_ref[...]
        out_ref[...] = jnp.where(hn > 0, hn, jnp.exp(jnp.minimum(hn, 0.0)) - 1.0)
        # TODO(synk): final feature dropout is identity here (inference mode).


def custom_gat_head_forward(h, w_fc, attn_w, adj, gamma, beta, run_mean, run_var,
                            *, adj_prepped=None):
    """h: [N, Fin]; w_fc: [Fout, Fin]; attn_w: [1, 2*Fout]; adj: [N, N] (adj[dst, src])."""
    f32, bf16 = jnp.float32, jnp.bfloat16
    N, Fin = h.shape
    Fout = w_fc.shape[0]

    Np, TM, TK = _tiling(N)
    FP = _round_up(Fout, 128)          # lane-dense feature dim
    FinP = _round_up(Fin, 128)         # lane-dense contraction dim for fc

    if adj_prepped is None:
        adj_prepped = prepare_adj(adj, Np)   # prefer caching this across calls

    # ---- host-side (cheap) packing / weight folding ----------------------------
    h_p = jnp.zeros((Np, FinP), bf16).at[:N, :Fin].set(h.astype(bf16))
    wT = jnp.zeros((FinP, FP), bf16).at[:Fin, :Fout].set(jnp.transpose(w_fc).astype(bf16))
    a_both = jnp.zeros((FP, 2), f32)
    a_both = a_both.at[:Fout, 0].set(attn_w[0, :Fout].astype(f32))    # a_src
    a_both = a_both.at[:Fout, 1].set(attn_w[0, Fout:].astype(f32))    # a_dst

    # fold BatchNorm1d (eval) into a single scale/shift
    scale = gamma.astype(f32) * jax.lax.rsqrt(run_var.astype(f32) + BN_EPS)
    shift = beta.astype(f32) - run_mean.astype(f32) * scale
    scale_p = jnp.zeros((1, FP), f32).at[0, :Fout].set(scale)
    shift_p = jnp.zeros((1, FP), f32).at[0, :Fout].set(shift)

    vmem_limit = max(32 * 1024 * 1024,
                     min(_vmem_capacity_bytes() * 3 // 4, 96 * 1024 * 1024))

    # ---- kernel 1: fc + attention projections ----------------------------------
    z, s = pl.pallas_call(
        gat_proj_kernel,
        out_shape=(jax.ShapeDtypeStruct((Np, FP), bf16),
                   jax.ShapeDtypeStruct((Np, 2), f32)),
        grid=(Np // TM,),
        in_specs=[pl.BlockSpec((TM, FinP), lambda i: (i, 0)),
                  pl.BlockSpec((FinP, FP), lambda i: (0, 0)),
                  pl.BlockSpec((FP, 2), lambda i: (0, 0))],
        out_specs=(pl.BlockSpec((TM, FP), lambda i: (i, 0)),
                   pl.BlockSpec((TM, 2), lambda i: (i, 0))),
        compiler_params=pltpu.CompilerParams(
            dimension_semantics=("parallel",),
            vmem_limit_bytes=vmem_limit),
    )(h_p, wT, a_both)

    # O(N) reshuffles (negligible): split projections into a column and a row.
    s_dst_col = s[:, 1:2]                   # [Np, 1]
    s_src_row = jnp.transpose(s[:, 0:1])    # [1, Np]

    # ---- kernel 2: online masked softmax + aggregation + BN + ELU --------------
    out = pl.pallas_call(
        gat_attn_kernel,
        out_shape=jax.ShapeDtypeStruct((Np, FP), f32),
        grid=(Np // TM, Np // TK),
        in_specs=[pl.BlockSpec((TM, 1), lambda i, j: (i, 0)),     # s_dst tile
                  pl.BlockSpec((1, TK), lambda i, j: (0, j)),     # s_src tile
                  pl.BlockSpec((TK, FP), lambda i, j: (j, 0)),    # z src tile (bf16)
                  pl.BlockSpec((TM, TK), lambda i, j: (i, j)),    # adj tile (int8)
                  pl.BlockSpec((1, FP), lambda i, j: (0, 0)),     # BN scale
                  pl.BlockSpec((1, FP), lambda i, j: (0, 0))],    # BN shift
        out_specs=pl.BlockSpec((TM, FP), lambda i, j: (i, 0)),
        scratch_shapes=[pltpu.VMEM((TM, 1), f32),    # running max m
                        pltpu.VMEM((TM, 1), f32),    # running denom l
                        pltpu.VMEM((TM, FP), f32)],  # running numerator acc
        compiler_params=pltpu.CompilerParams(
            dimension_semantics=("parallel", "arbitrary"),
            vmem_limit_bytes=vmem_limit),
    )(s_dst_col, s_src_row, z, adj_prepped, scale_p, shift_p)

    return out[:N, :Fout]


def reference_forward(h, w_fc, attn_w, adj, gamma, beta, run_mean, run_var):
    """Pure-JAX reference of the PyTorch module (eval mode), dense graph."""
    Fout = w_fc.shape[0]
    z = h @ w_fc.T
    a_src = attn_w[0, :Fout]
    a_dst = attn_w[0, Fout:]
    s_src = z @ a_src
    s_dst = z @ a_dst
    e = s_dst[:, None] + s_src[None, :]
    e = jnp.where(e > 0, e, NEG_SLOPE * e)
    e = jnp.where(adj > 0, e, -jnp.inf)
    alpha = jax.nn.softmax(e, axis=-1)
    alpha = jnp.where(adj > 0, alpha, 0.0)
    h_agg = alpha @ z
    hn = (h_agg - run_mean) / jnp.sqrt(run_var + BN_EPS) * gamma + beta
    return jnp.where(hn > 0, hn, jnp.exp(hn) - 1.0)


if __name__ == "__main__":
    def run_case(key, N, Fin, Fout):
        k1, k2, k3, k4, k5, k6, k7, k8 = jax.random.split(key, 8)
        h = jax.random.normal(k1, (N, Fin), jnp.float32)
        w_fc = jax.random.normal(k2, (Fout, Fin), jnp.float32) / jnp.sqrt(Fin)   # fc.weight
        attn_w = jax.random.normal(k3, (1, 2 * Fout), jnp.float32) * 0.2         # attn_fc.weight
        gamma = 1.0 + 0.1 * jax.random.normal(k5, (Fout,), jnp.float32)          # bn weight
        beta = 0.1 * jax.random.normal(k6, (Fout,), jnp.float32)                 # bn bias
        run_mean = 0.1 * jax.random.normal(k7, (Fout,), jnp.float32)
        run_var = jax.random.uniform(k8, (Fout,), jnp.float32, 0.5, 1.5)
        # random sparse adjacency + self-loops (adj[dst, src])
        adj = (jax.random.uniform(k4, (N, N)) < 0.3).astype(jnp.float32)
        adj = jnp.maximum(adj, jnp.eye(N, dtype=jnp.float32))

        Np, _, _ = _tiling(N)
        adj_prepped = prepare_adj(adj, Np)      # cache across calls in real use
        out = custom_gat_head_forward(h, w_fc, attn_w, adj, gamma, beta,
                                      run_mean, run_var, adj_prepped=adj_prepped)
        out = jax.block_until_ready(out)
        ref = reference_forward(h, w_fc, attn_w, adj, gamma, beta, run_mean, run_var)
        assert out.shape == (N, Fout)
        # bf16 MXU operands (h/W^T, z, p) -> looser tolerance than pure-f32
        assert jnp.allclose(out, ref, atol=3e-2, rtol=3e-2), \
            f"mismatch vs reference (N={N}, Fin={Fin}, Fout={Fout})"

    key = jax.random.PRNGKey(0)
    ka, kb = jax.random.split(key)
    run_case(ka, 16, 32, 16)      # small graph: single-block path
    run_case(kb, 600, 48, 24)     # larger graph: exercises src-axis online-softmax tiling
    print("KERNEL_OK")
</pallas_src>

<mosaic_0001>
module attributes {stable_mosaic.version = 11 : i64} {
  func.func @gat_proj_kernel(%arg0: i32, %arg1: memref<32x128xbf16, #tpu.memory_space<vmem>>, %arg2: memref<128x128xbf16, #tpu.memory_space<vmem>>, %arg3: memref<128x2xf32, #tpu.memory_space<vmem>>, %arg4: memref<32x128xbf16, #tpu.memory_space<vmem>>, %arg5: memref<32x2xf32, #tpu.memory_space<vmem>>) attributes {dimension_semantics = [#tpu.dimension_semantics<parallel>], iteration_bounds = array<i64: 1>, scalar_prefetch = 0 : i64, scratch_operands = 0 : i64, tpu.core_type = #tpu.core_type<tc>, window_params = [{transform_indices = @transform_0, window_bounds = array<i64: 32, 128>}, {pipeline_mode = #tpu.pipeline_mode<synchronous>, transform_indices = @transform_1, window_bounds = array<i64: 128, 128>}, {pipeline_mode = #tpu.pipeline_mode<synchronous>, transform_indices = @transform_2, window_bounds = array<i64: 128, 2>}, {transform_indices = @transform_3, window_bounds = array<i64: 32, 128>}, {transform_indices = @transform_4, window_bounds = array<i64: 32, 2>}]} {
    %c0 = arith.constant 0 : index
    %c0_0 = arith.constant 0 : index
    %0 = vector.load %arg1[%c0, %c0_0] : memref<32x128xbf16, #tpu.memory_space<vmem>>, vector<32x128xbf16>
    %c0_1 = arith.constant 0 : index
    %c0_2 = arith.constant 0 : index
    %1 = vector.load %arg2[%c0_1, %c0_2] : memref<128x128xbf16, #tpu.memory_space<vmem>>, vector<128x128xbf16>
    %cst = arith.constant dense<0.000000e+00> : vector<32x128xf32>
    %2 = tpu.matmul %0, %1, %cst {dimension_numbers = #tpu.dot_dimension_numbers<[1], [0], [0], [1], [0, 0, 1, 1], [], []>} : vector<32x128xbf16>, vector<128x128xbf16>, vector<32x128xf32> -> vector<32x128xf32>
    %3 = arith.truncf %2 : vector<32x128xf32> to vector<32x128xbf16>
    %c0_3 = arith.constant 0 : index
    %c0_4 = arith.constant 0 : index
    %4 = vector.load %arg4[%c0_3, %c0_4] : memref<32x128xbf16, #tpu.memory_space<vmem>>, vector<32x128xbf16>
    tpu.vector_store %arg4[%c0_3, %c0_4], %3 {strides = array<i32>} : memref<32x128xbf16, #tpu.memory_space<vmem>>, vector<32x128xbf16>,
    %c0_5 = arith.constant 0 : index
    %c0_6 = arith.constant 0 : index
    %5 = vector.load %arg3[%c0_5, %c0_6] : memref<128x2xf32, #tpu.memory_space<vmem>>, vector<128x2xf32>
    %cst_7 = arith.constant dense<0.000000e+00> : vector<32x2xf32>
    %6 = tpu.matmul %2, %5, %cst_7 {dimension_numbers = #tpu.dot_dimension_numbers<[1], [0], [0], [1], [0, 0, 1, 1], [], []>} : vector<32x128xf32>, vector<128x2xf32>, vector<32x2xf32> -> vector<32x2xf32>
    %c0_8 = arith.constant 0 : index
    %c0_9 = arith.constant 0 : index
    %7 = vector.load %arg5[%c0_8, %c0_9] : memref<32x2xf32, #tpu.memory_space<vmem>>, vector<32x2xf32>
    tpu.vector_store %arg5[%c0_8, %c0_9], %6 {strides = array<i32>} : memref<32x2xf32, #tpu.memory_space<vmem>>, vector<32x2xf32>,
    return
  }
  func.func @transform_0(%arg0: i32) -> (i32, i32) {
    %c0_i32 = arith.constant 0 : i32
    %c0_i32_0 = arith.constant 0 : i32
    return %arg0, %c0_i32 : i32, i32
  }
  func.func @transform_1(%arg0: i32) -> (i32, i32) {
    %c0_i32 = arith.constant 0 : i32
    %c0_i32_0 = arith.constant 0 : i32
    %c0_i32_1 = arith.constant 0 : i32
    return %c0_i32, %c0_i32_0 : i32, i32
  }
  func.func @transform_2(%arg0: i32) -> (i32, i32) {
    %c0_i32 = arith.constant 0 : i32
    %c0_i32_0 = arith.constant 0 : i32
    %c0_i32_1 = arith.constant 0 : i32
    return %c0_i32, %c0_i32_0 : i32, i32
  }
  func.func @transform_3(%arg0: i32) -> (i32, i32) {
    %c0_i32 = arith.constant 0 : i32
    %c0_i32_0 = arith.constant 0 : i32
    return %arg0, %c0_i32 : i32, i32
  }
  func.func @transform_4(%arg0: i32) -> (i32, i32) {
    %c0_i32 = arith.constant 0 : i32
    %c0_i32_0 = arith.constant 0 : i32
    return %arg0, %c0_i32 : i32, i32
  }
}

</mosaic_0001>

<bundles_post_ra>
// kernel: tpu_custom_call.1
= control target key start
LH: loop header
LB: loop body
LE: loop exit
PB: predicated region body
PF: predicated region fallthrough
CT: control target
= control target key end

     0   :  { %s566_s0 = inlined_call_operand.vmem [shape: bf16[32,128], index: 0, kind: input, shape index: {}]   ;;  %s567_s1 = inlined_call_operand.vmem [shape: bf16[128,128], index: 1, kind: input, shape index: {}]   ;;  %s568_s2 = inlined_call_operand.vmem [shape: f32[128,2], index: 2, kind: input, shape index: {}]   ;;  %s569_s3 = inlined_call_operand.hbm [shape: bf16[32,128], index: 3, kind: output, shape index: {0}]   ;;  %s570_s4 = inlined_call_operand.vmem [shape: f32[32,2], index: 4, kind: output, shape index: {1}]  }
   0x1   :  { %v413_v0 = vld [vmem:[%s567_s1 + $0x38] sm:$0xff]   ;;  %v414_v1 = vld [vmem:[%s567_s1 + $0x30] sm:$0xff]   ;;  %v415_v2 = vld [vmem:[%s567_s1 + $0x28] sm:$0xff]  }
   0x2   :  { %352 = vmatprep.subr.bf16.mxu0 %v413_v0  ;;  %v416_v3 = vld [vmem:[%s567_s1 + $0x20] sm:$0xff]   ;;  %v182_v5 = vld [vmem:[%s568_s2 + $0x78] sm:$0xff]  ;;  %v181_v6 = vld [vmem:[%s568_s2 + $0x70] sm:$0xff] }
   0x3   :  { %353 = vmatpush3.bf16.msra.mxu0 %v413_v0  ;;  %v421_v4 = vld [vmem:[%s566_s0] sm:$0xff]   ;;  %372 = vmatprep.subr.mxu1 %v182_v5  ;;  %v417_v7 = vld [vmem:[%s567_s1 + $0x18] sm:$0xff]   ;;  %v180_v8 = vld [vmem:[%s568_s2 + $0x68] sm:$0xff] }
   0x4   :  { %354 = vmatprep.subr.bf16.mxu0 %v414_v1  ;;  %368 = vmatprep.mubr.bf16.mxu0 %v421_v4  ;;  %v179_v9 = vld [vmem:[%s568_s2 + $0x60] sm:$0xff] }
   0x5   :  { %373 = vmatpush3.msra.mxu1 %v182_v5 }
   0x6   :  { %374 = vmatprep.subr.mxu1 %v181_v6 }
   0x7   :  { %355 = vmatpush3.bf16.msra.mxu0 %v414_v1  ;;  %375 = vmatpush3.msra.mxu1 %v181_v6 }
   0x8   :  { %356 = vmatprep.subr.bf16.mxu0 %v415_v2 }
   0xb   :  { %357 = vmatpush3.bf16.msra.mxu0 %v415_v2 }
   0xc   :  { %358 = vmatprep.subr.bf16.mxu0 %v416_v3 }
   0xd   :  { %10 = vsyncpa [#allocation3], 0  ;;  %376 = vmatprep.subr.mxu1 %v180_v8  ;;  %v418_v10 = vld [vmem:[%s567_s1 + $0x10] sm:$0xff]   ;;  %v178_v11 = vld [vmem:[%s568_s2 + $0x58] sm:$0xff]  ;;  %s445_s13 = smov [#allocation2]  }
   0xe   :  { %377 = vmatpush3.msra.mxu1 %v180_v8  ;;  %v177_v12 = vld [vmem:[%s568_s2 + $0x50] sm:$0xff]  ;;  %v419_v13 = vld [vmem:[%s567_s1 + $0x8] sm:$0xff]   ;;  %v175_v15 = vld [vmem:[%s568_s2 + $0x40] sm:$0xff]  ;;  %s278_s14 = sshll.u32 %s445_s13, 4  ;;  %s279_s14 = int_to_ptr.vmem [resolvable:$true] %s278_s14 }
   0xf   :  { %359 = vmatpush3.bf16.msra.mxu0 %v416_v3  ;;  %378 = vmatprep.subr.mxu1 %v179_v9  ;;  %v176_v14 = vld [vmem:[%s568_s2 + $0x48] sm:$0xff]  ;;  %v420_v16 = vld [vmem:[%s567_s1] sm:$0xff]   ;;  %v174_v17 = vld [vmem:[%s568_s2 + $0x38] sm:$0xff]  ;;  %s423_s15 = scalar_lea.vmem %s279_s14, 256  ;;  %p428_p1 = scmp.lt.s32.totalorder %s279_s14, %s279_s14 }
  0x10   :  { %360 = vmatprep.subr.bf16.mxu0 %v417_v7  ;;  %379 = vmatpush3.msra.mxu1 %v179_v9  ;;  %v173_v18 = vld [vmem:[%s568_s2 + $0x30] sm:$0xff]  ;;  %v172_v19 = vld [vmem:[%s568_s2 + $0x28] sm:$0xff]  ;;  %v171_v21 = vld [vmem:[%s568_s2 + $0x20] sm:$0xff]  ;;  %p424_p0 = scmp.ne.s32.totalorder %s279_s14, %s423_s15  ;;  %p429_p2 = scmp.lt.s32.totalorder %s423_s15, %s423_s15 }
  0x11   :  { %380 = vmatprep.subr.mxu1 %v178_v11  ;;  %v422_v20 = vld [vmem:[%s566_s0 + $0x8] sm:$0xff]   ;;  %v170_v22 = vld [vmem:[%s568_s2 + $0x18] sm:$0xff]  ;;  %v169_v23 = vld [vmem:[%s568_s2 + $0x10] sm:$0xff] }
  0x12   :  { %381 = vmatpush3.msra.mxu1 %v178_v11  ;;  %v168_v24 = vld [vmem:[%s568_s2 + $0x8] sm:$0xff]  ;;  %v167_v25 = vld [vmem:[%s568_s2] sm:$0xff]  ;;  %p430_p3 = por %p429_p2, %p428_p1 }
  0x13   :  { %361 = vmatpush3.bf16.msra.mxu0 %v417_v7  ;;  %382 = vmatprep.subr.mxu1 %v177_v12 }
  0x14   :  { %362 = vmatprep.subr.bf16.mxu0 %v418_v10  ;;  %383 = vmatpush3.msra.mxu1 %v177_v12  ;;  %p431_p4 = pnand %p430_p3, %p424_p0 }
  0x15   :  { %384 = vmatprep.subr.mxu1 %v176_v14 }
  0x16   :  { %385 = vmatpush3.msra.mxu1 %v176_v14 }
  0x17   :  { %363 = vmatpush3.bf16.msra.mxu0 %v418_v10  ;;  %386 = vmatprep.subr.mxu1 %v175_v15 }
  0x18   :  { %364 = vmatprep.subr.bf16.mxu0 %v419_v13  ;;  %387 = vmatpush3.msra.mxu1 %v175_v15 }
  0x19   :  { %388 = vmatprep.subr.mxu1 %v174_v17 }
  0x1a   :  { %389 = vmatpush3.msra.mxu1 %v174_v17 }
  0x1b   :  { %365 = vmatpush3.bf16.msra.mxu0 %v419_v13  ;;  %390 = vmatprep.subr.mxu1 %v173_v18 }
  0x1c   :  { %366 = vmatprep.subr.bf16.mxu0 %v420_v16  ;;  %391 = vmatpush3.msra.mxu1 %v173_v18 }
  0x1d   :  { %392 = vmatprep.subr.mxu1 %v172_v19 }
  0x1e   :  { %393 = vmatpush3.msra.mxu1 %v172_v19 }
  0x1f   :  { %367 = vmatpush3.bf16.msra.mxu0 %v420_v16  ;;  %394 = vmatprep.subr.mxu1 %v171_v21 }
  0x20   :  { %395 = vmatpush3.msra.mxu1 %v171_v21 }
  0x21   :  { %396 = vmatprep.subr.mxu1 %v170_v22 }
  0x22   :  { %369 = vmatmul.mubr.bf16.vlgmr.msra.gmra.mxu0 %v422_v20  ;;  %397 = vmatpush3.msra.mxu1 %v170_v22 }
  0x23   :  { %398 = vmatprep.subr.mxu1 %v169_v23 }
  0x24   :  { %399 = vmatpush3.msra.mxu1 %v169_v23 }
  0x25   :  { %400 = vmatprep.subr.mxu1 %v168_v24 }
  0x26   :  { %401 = vmatpush3.msra.mxu1 %v168_v24 }
  0x27   :  { %402 = vmatprep.subr.mxu1 %v167_v25 }
  0x28   :  { %403 = vmatpush3.msra.mxu1 %v167_v25 }
  0xe2   :  { %v370_v26 = vpop.f32.mrf.mxu0 }
  0xe4   :  { %v132_v27 = vpop.f32.mrf.mxu0 }
  0xe5   :  { %404 = vmatprep.mubr.f32.mxu1 %v132_v27 }
  0xe6   :  { %v371_v28 = vpop.f32.mrf.mxu0 }
  0xe7   :  { %v319_v29 = vpack.c.bf16 %v371_v28, %v370_v26 }
  0xe8   :  { %v135_v30 = vpop.f32.mrf.mxu0 }
  0xe9   :  { %321 = vst [vmem:[#allocation2 + $0x8] sm:$0xff] %v319_v29   ;;  %v314_v31 = vpack.c.bf16 %v135_v30, %v132_v27  ;;  %405 = vmatmul.mubr.f32.vlgmr.msra.gmra.mxu1 %v135_v30 }
  0xea   :  { %407 = vmatprep.mubr.f32.mxu1 %v370_v26 }
  0xeb   :  { %315 = vst [vmem:[#allocation2] sm:$0xff] %v314_v31  }
  0xed   :  { %408 = vmatmul.mubr.f32.gmra.mxu1 %v371_v28 }
  0xee   :  { %434 = shalt.err (!%p431_p4)
}
  0xef   :  { %s446_s2 = smov 64   ;;  %s447_s16 = smov 4   ;;  %vm268_vm0 = vcmask 15360  }
  0xf0   :  { %284 = dma.vmem_to_hbm [thread:$0]  %s279_s14, 256, %s569_s3, [#allocation3], %s446_s2, %s446_s2, %s447_s16  }
 0x1a9   :  { %v406_v32 = vpop.f32.mrf.mxu1 }
 0x1aa   :  { %270 = vst.msk [vmem:[%s570_s4 + $0x8] sm:$0xff] %vm268_vm0, %v406_v32 }
 0x1ab   :  { %v249_v33 = vpop.f32.mrf.mxu1 }
 0x1ac   :  { %269 = vst.msk [vmem:[%s570_s4] sm:$0xff] %vm268_vm0, %v249_v33 }
 0x1ad   :  { %v409_v34 = vpop.f32.mrf.mxu1 }
 0x1ae   :  { %272 = vst.msk [vmem:[%s570_s4 + $0x18] sm:$0xff] %vm268_vm0, %v409_v34 }
 0x1af   :  { %v259_v35 = vpop.f32.mrf.mxu1 }
 0x1b0   :  { %271 = vst.msk [vmem:[%s570_s4 + $0x10] sm:$0xff] %vm268_vm0, %v259_v35 }
 0x1b1   :  { %443 = dma.done.wait [#allocation3], 256  }
 0x1b2   :  { %444 = vsyncadd [#allocation3], 4294967040 }
 0x1b3   :  { %292 = vsyncpa [#allocation3], 1 }

</bundles_post_ra>
